<compile_context>
chip_gen: v6e
topology: v6e:2x2x1
jax: 0.10.0
libtpu: 0.0.40
codegen_flags: <defaults>
</compile_context>

<pallas_src>
import jax
import jax.numpy as jnp
from jax.experimental import pallas as pl
from jax.experimental.pallas import tpu as pltpu

_EPS = 1e-5
_LANES = 128
_RESIDENT_MAX_BYTES = 6 * 1024 * 1024   # slab size cutoff for the 1-pass path
_VMEM_LIMIT_BYTES = 32 * 1024 * 1024


def _default_max_tile_rows():
    """Per-generation tile rows for the streaming path.

    2 MiB tiles on v7x (3.2 TB/s HBM per TC needs bigger tiles to hide the
    fixed per-grid-step overhead), 1 MiB tiles on v5e/v6e.
    """
    try:
        kind = jax.devices()[0].device_kind.lower()
    except Exception:
        kind = ""
    return 4096 if "v7" in kind else 2048


# --------------------------------------------------------------------------
# Resident single-pass kernel: whole slab in one VMEM block, 1 read + 1 write.
# --------------------------------------------------------------------------
def _make_resident_kernel(total_elems: int, padded_elems: int):
    inv_n = 1.0 / float(total_elems)          # divide by the TRUE element count
    pad_count = float(padded_elems - total_elems)

    def kernel(prm, x_ref, o_ref):
        # prm (SMEM f32[12]):
        #  [0] conv1.w  [1] conv1.b  [2] bn1.g        [3] bn1.b
        #  [4] conv2.w  [5] conv2.b  [6] nested.bn.g  [7] nested.bn.b
        #  [8] nested.conv.w [9] nested.conv.b [10] wrapped.bn.g [11] wrapped.bn.b
        x = x_ref[...]

        # --- stage 1: stats of raw x (zero padding contributes 0 to both) ---
        m0 = jnp.sum(x) * inv_n
        v0 = jnp.maximum(jnp.sum(x * x) * inv_n - m0 * m0, 0.0)
        w1, g1, be1 = prm[0], prm[2], prm[3]
        # bn1(conv1(x)) == a*x + b  (conv1 bias cancels through the batch mean)
        a = g1 * w1 * jax.lax.rsqrt(w1 * w1 * v0 + _EPS)
        b = be1 - a * m0

        z1 = jnp.maximum(a * x + b, 0.0)

        # --- stage 2: stats of z1 (each padded element contributed relu(b)) --
        zb = jnp.maximum(b, 0.0)
        sum_z = jnp.sum(z1) - pad_count * zb
        sumsq_z = jnp.sum(z1 * z1) - pad_count * zb * zb
        m1 = sum_z * inv_n
        v1 = jnp.maximum(sumsq_z * inv_n - m1 * m1, 0.0)

        w2, g2, be2 = prm[4], prm[6], prm[7]
        wn, g3, be3 = prm[8], prm[10], prm[11]
        # nested.bn(conv2(z1)) == s2*(z1 - m1) + be2   (conv2 bias cancels)
        s2 = g2 * w2 * jax.lax.rsqrt(w2 * w2 * v1 + _EPS)
        # nested.conv(.)       == wn*s2*(z1 - m1) + (wn*be2 + bnn)
        c2 = wn * s2
        # wrapped.bn(.)        == s3*(z1 - m1) + be3   (that shift cancels too)
        s3 = g3 * c2 * jax.lax.rsqrt(c2 * c2 * v1 + _EPS)
        c = s3
        d = be3 - s3 * m1

        o_ref[...] = jnp.maximum(c * z1 + d, 0.0)

    return kernel


# --------------------------------------------------------------------------
# Tiled 3-phase streaming kernel for slabs that don't fit the resident budget.
# --------------------------------------------------------------------------
def _make_tiled_kernel(total_elems: int, padded_elems: int):
    inv_n = 1.0 / float(total_elems)
    pad_count = float(padded_elems - total_elems)

    def kernel(prm, x_ref, o_ref, acc_ref, coef_ref):
        # acc_ref  (SMEM f32[4]): [sum_x, sumsq_x, sum_z1, sumsq_z1]
        # coef_ref (SMEM f32[4]): [a, b, c, d]  (hoisted scalar coefficients)
        phase = pl.program_id(0)
        tile = pl.program_id(1)

        x = x_ref[...]

        @pl.when(jnp.logical_and(phase == 0, tile == 0))
        def _init():
            acc_ref[0] = jnp.float32(0.0)
            acc_ref[1] = jnp.float32(0.0)
            acc_ref[2] = jnp.float32(0.0)
            acc_ref[3] = jnp.float32(0.0)

        @pl.when(phase == 0)
        def _accum_x_stats():
            acc_ref[0] += jnp.sum(x)
            acc_ref[1] += jnp.sum(x * x)

        # Hoisted: compute (a, b) exactly once, at the first phase-1 tile.
        @pl.when(jnp.logical_and(phase == 1, tile == 0))
        def _stage1_coeffs():
            m0 = acc_ref[0] * inv_n
            v0 = jnp.maximum(acc_ref[1] * inv_n - m0 * m0, 0.0)
            w1, g1, be1 = prm[0], prm[2], prm[3]
            a = g1 * w1 * jax.lax.rsqrt(w1 * w1 * v0 + _EPS)
            coef_ref[0] = a
            coef_ref[1] = be1 - a * m0

        @pl.when(phase == 1)
        def _accum_z1_stats():
            a, b = coef_ref[0], coef_ref[1]
            z1 = jnp.maximum(a * x + b, 0.0)
            acc_ref[2] += jnp.sum(z1)
            acc_ref[3] += jnp.sum(z1 * z1)

        # Hoisted: compute (c, d) exactly once, at the first phase-2 tile.
        @pl.when(jnp.logical_and(phase == 2, tile == 0))
        def _stage2_coeffs():
            b = coef_ref[1]
            zb = jnp.maximum(b, 0.0)
            sum_z = acc_ref[2] - pad_count * zb
            sumsq_z = acc_ref[3] - pad_count * zb * zb
            m1 = sum_z * inv_n
            v1 = jnp.maximum(sumsq_z * inv_n - m1 * m1, 0.0)
            w2, g2, be2 = prm[4], prm[6], prm[7]
            wn, g3, be3 = prm[8], prm[10], prm[11]
            s2 = g2 * w2 * jax.lax.rsqrt(w2 * w2 * v1 + _EPS)
            c2 = wn * s2
            s3 = g3 * c2 * jax.lax.rsqrt(c2 * c2 * v1 + _EPS)
            coef_ref[2] = s3
            coef_ref[3] = be3 - s3 * m1

        @pl.when(phase == 2)
        def _apply():
            a, b = coef_ref[0], coef_ref[1]
            c, d = coef_ref[2], coef_ref[3]
            z1 = jnp.maximum(a * x + b, 0.0)
            o_ref[...] = jnp.maximum(c * z1 + d, 0.0)

    return kernel


def m_forward(x_nchw, params_vec, *, resident_max_bytes=None, max_tile_rows=None):
    """x_nchw: f32[N, 1, H, W]; params_vec: f32[12]. Returns f32[N, 1, H, W]."""
    N, C, H, W = x_nchw.shape
    assert C == 1, "module M only supports a single channel"
    total = N * C * H * W
    if resident_max_bytes is None:
        resident_max_bytes = _RESIDENT_MAX_BYTES

    rows = -(-total // _LANES)
    rows8 = -(-rows // 8) * 8           # minimum slab granule: (8, 128) f32
    slab_bytes = rows8 * _LANES * 4

    x_flat = x_nchw.astype(jnp.float32).reshape(total)

    if slab_bytes <= resident_max_bytes:
        # ---------------- resident single-pass path (1 read + 1 write) ------
        rows_p = rows8
        padded = rows_p * _LANES
        if padded != total:
            x_flat = jnp.pad(x_flat, (0, padded - total))
        x2d = x_flat.reshape(rows_p, _LANES)

        out2d = pl.pallas_call(
            _make_resident_kernel(total, padded),
            out_shape=jax.ShapeDtypeStruct((rows_p, _LANES), jnp.float32),
            grid_spec=pltpu.PrefetchScalarGridSpec(
                num_scalar_prefetch=0,
                grid=(1,),
                in_specs=[
                    pl.BlockSpec(memory_space=pltpu.SMEM),              # params
                    pl.BlockSpec((rows_p, _LANES), lambda i: (0, 0)),   # x slab
                ],
                out_specs=pl.BlockSpec((rows_p, _LANES), lambda i: (0, 0)),
            ),
            compiler_params=pltpu.CompilerParams(
                dimension_semantics=("arbitrary",),
                vmem_limit_bytes=_VMEM_LIMIT_BYTES,
            ),
        )(params_vec, x2d)
    else:
        # ---------------- tiled 3-phase streaming path ----------------------
        tm = max_tile_rows if max_tile_rows is not None else _default_max_tile_rows()
        tm = min(tm, rows8)
        tm = max(8, (tm // 8) * 8)
        # Shrink the tile until row-padding waste is small (<~1/16 of rows).
        while tm > 8 and (-(-rows8 // tm) * tm - rows8) > max(rows8 // 16, 8):
            tm //= 2
        tm = max(8, (tm // 8) * 8)

        num_tiles = -(-rows8 // tm)
        rows_p = num_tiles * tm
        padded = rows_p * _LANES
        if padded != total:
            x_flat = jnp.pad(x_flat, (0, padded - total))
        x2d = x_flat.reshape(rows_p, _LANES)

        out2d = pl.pallas_call(
            _make_tiled_kernel(total, padded),
            out_shape=jax.ShapeDtypeStruct((rows_p, _LANES), jnp.float32),
            grid_spec=pltpu.PrefetchScalarGridSpec(
                num_scalar_prefetch=0,
                grid=(3, num_tiles),   # (phase, tile), phase slowest
                in_specs=[
                    pl.BlockSpec(memory_space=pltpu.SMEM),                # params
                    pl.BlockSpec((tm, _LANES), lambda p, t: (t, 0)),      # x tiles
                ],
                # Parked-output trick: the output block index stays at 0 (no
                # HBM writeback) during the two reduction phases because the
                # kernel never writes o_ref there; Pallas only writes a block
                # back when its index changes, which first happens after
                # phase-2/tile-0 has filled it.  Phase 2 rewrites every block.
                out_specs=pl.BlockSpec((tm, _LANES), lambda p, t: (t * (p // 2), 0)),
                scratch_shapes=[
                    pltpu.SMEM((4,), jnp.float32),   # running sums
                    pltpu.SMEM((4,), jnp.float32),   # hoisted coefficients
                ],
            ),
            compiler_params=pltpu.CompilerParams(
                dimension_semantics=("arbitrary", "arbitrary"),
                vmem_limit_bytes=_VMEM_LIMIT_BYTES,
            ),
        )(params_vec, x2d)

    out_flat = out2d.reshape(padded)
    if padded != total:
        out_flat = out_flat[:total]
    return out_flat.reshape(N, C, H, W)


def _reference(x_nchw, prm):
    """Pure-JAX reference mirroring the torch module op-by-op."""
    def bn(v, g, b):
        m = jnp.mean(v)
        var = jnp.mean((v - m) * (v - m))
        return (v - m) * jax.lax.rsqrt(var + _EPS) * g + b

    x = x_nchw.astype(jnp.float32)
    x = x * prm[0] + prm[1]          # conv1
    x = bn(x, prm[2], prm[3])        # bn1
    x = jnp.maximum(x, 0.0)          # relu
    # conv3 output unused
    x = x * prm[4] + prm[5]          # conv2
    x = bn(x, prm[6], prm[7])        # nested.bn
    x = x * prm[8] + prm[9]          # nested.conv
    x = bn(x, prm[10], prm[11])      # wrapped.bn
    return jnp.maximum(x, 0.0)       # final relu


def init_params(key):
    """Conv2d(1,1,1): weight/bias ~ U(-1,1) (fan_in=1); BN: gamma=1, beta=0."""
    ks = jax.random.split(key, 6)
    u = lambda k: jax.random.uniform(k, (), minval=-1.0, maxval=1.0)
    one, zero = jnp.float32(1.0), jnp.float32(0.0)
    return jnp.stack([
        u(ks[0]), u(ks[1]),   # conv1 w, b
        one, zero,            # bn1 gamma/beta
        u(ks[2]), u(ks[3]),   # conv2 w, b
        one, zero,            # nested.bn gamma/beta
        u(ks[4]), u(ks[5]),   # nested.conv w, b
        one, zero,            # wrapped.bn gamma/beta
    ]).astype(jnp.float32)


if __name__ == "__main__":
    key = jax.random.PRNGKey(0)
    k_x, k_x2, k_p = jax.random.split(key, 3)
    params = init_params(k_p)

    # Small shape: resident single-pass path + ragged-tail pad correction.
    x_small = jax.random.normal(k_x, (2, 1, 16, 16), dtype=jnp.float32)
    out_small = m_forward(x_small, params)
    jax.block_until_ready(out_small)
    ref_small = _reference(x_small, params)
    assert out_small.shape == x_small.shape and out_small.dtype == jnp.float32
    assert bool(jnp.all(out_small >= 0.0))
    assert bool(jnp.allclose(out_small, ref_small, rtol=1e-3, atol=1e-3)), (
        float(jnp.max(jnp.abs(out_small - ref_small))))

    # Larger shape (512 KiB slab): still takes the resident single-pass path.
    x_big = jax.random.normal(k_x2, (4, 1, 128, 256), dtype=jnp.float32)
    out_big = m_forward(x_big, params)
    jax.block_until_ready(out_big)
    ref_big = _reference(x_big, params)
    assert bool(jnp.allclose(out_big, ref_big, rtol=1e-3, atol=1e-3)), (
        float(jnp.max(jnp.abs(out_big - ref_big))))

    # Force the tiled 3-phase streaming path (used for slabs > resident budget)
    # on the same data, with small tiles so multiple tiles + the hoisted SMEM
    # coefficients + parked-output writeback are all exercised.
    out_tiled = m_forward(x_big, params, resident_max_bytes=0, max_tile_rows=256)
    jax.block_until_ready(out_tiled)
    assert bool(jnp.allclose(out_tiled, ref_big, rtol=1e-3, atol=1e-3)), (
        float(jnp.max(jnp.abs(out_tiled - ref_big))))

    print("KERNEL_OK")
</pallas_src>

<mosaic_0001>
module attributes {stable_mosaic.version = 11 : i64} {
  func.func @kernel(%arg0: i32, %arg1: memref<12xf32, #tpu.memory_space<smem>>, %arg2: memref<8x128xf32, #tpu.memory_space<vmem>>, %arg3: memref<8x128xf32, #tpu.memory_space<vmem>>) attributes {dimension_semantics = [#tpu.dimension_semantics<arbitrary>], iteration_bounds = array<i64: 1>, scalar_prefetch = 0 : i64, scratch_operands = 0 : i64, tpu.core_type = #tpu.core_type<tc>, window_params = [{transform_indices = @transform_0, window_bounds = array<i64: 12>}, {pipeline_mode = #tpu.pipeline_mode<synchronous>, transform_indices = @transform_1, window_bounds = array<i64: 8, 128>}, {pipeline_mode = #tpu.pipeline_mode<synchronous>, transform_indices = @transform_2, window_bounds = array<i64: 8, 128>}]} {
    %c0 = arith.constant 0 : index
    %c0_0 = arith.constant 0 : index
    %0 = vector.load %arg2[%c0, %c0_0] : memref<8x128xf32, #tpu.memory_space<vmem>>, vector<8x128xf32>
    %1 = vector.shape_cast %0 : vector<8x128xf32> to vector<1x8x128xf32>
    %cst = arith.constant dense<0.000000e+00> : vector<1xf32>
    %2 = vector.multi_reduction <add>, %1, %cst [1, 2] : vector<1x8x128xf32> to vector<1xf32>
    %3 = vector.shape_cast %2 : vector<1xf32> to vector<1x1x1xf32>
    %4 = vector.extract %3[0, 0, 0] : f32 from vector<1x1x1xf32>
    %cst_1 = arith.constant 0.001953125 : f32
    %5 = arith.mulf %4, %cst_1 : f32
    %6 = arith.mulf %0, %0 : vector<8x128xf32>
    %7 = vector.shape_cast %6 : vector<8x128xf32> to vector<1x8x128xf32>
    %cst_2 = arith.constant dense<0.000000e+00> : vector<1xf32>
    %8 = vector.multi_reduction <add>, %7, %cst_2 [1, 2] : vector<1x8x128xf32> to vector<1xf32>
    %9 = vector.shape_cast %8 : vector<1xf32> to vector<1x1x1xf32>
    %10 = vector.extract %9[0, 0, 0] : f32 from vector<1x1x1xf32>
    %cst_3 = arith.constant 0.001953125 : f32
    %11 = arith.mulf %10, %cst_3 : f32
    %12 = arith.mulf %5, %5 : f32
    %13 = arith.subf %11, %12 : f32
    %cst_4 = arith.constant 0.000000e+00 : f32
    %14 = arith.maximumf %13, %cst_4 : f32
    %c0_5 = arith.constant 0 : index
    %15 = memref.load %arg1[%c0_5] : memref<12xf32, #tpu.memory_space<smem>>
    %c2 = arith.constant 2 : index
    %16 = memref.load %arg1[%c2] : memref<12xf32, #tpu.memory_space<smem>>
    %c3 = arith.constant 3 : index
    %17 = memref.load %arg1[%c3] : memref<12xf32, #tpu.memory_space<smem>>
    %18 = arith.mulf %16, %15 : f32
    %19 = arith.mulf %15, %15 : f32
    %20 = arith.mulf %19, %14 : f32
    %cst_6 = arith.constant 9.99999974E-6 : f32
    %21 = arith.addf %20, %cst_6 : f32
    %22 = math.rsqrt %21 : f32
    %23 = arith.mulf %18, %22 : f32
    %24 = arith.mulf %23, %5 : f32
    %25 = arith.subf %17, %24 : f32
    %26 = vector.broadcast %23 : f32 to vector<8x128xf32>
    %27 = arith.mulf %26, %0 : vector<8x128xf32>
    %28 = vector.broadcast %25 : f32 to vector<8x128xf32>
    %29 = arith.addf %27, %28 : vector<8x128xf32>
    %cst_7 = arith.constant 0.000000e+00 : f32
    %30 = vector.broadcast %cst_7 : f32 to vector<8x128xf32>
    %31 = arith.maximumf %29, %30 : vector<8x128xf32>
    %cst_8 = arith.constant 0.000000e+00 : f32
    %32 = arith.maximumf %25, %cst_8 : f32
    %33 = vector.shape_cast %31 : vector<8x128xf32> to vector<1x8x128xf32>
    %cst_9 = arith.constant dense<0.000000e+00> : vector<1xf32>
    %34 = vector.multi_reduction <add>, %33, %cst_9 [1, 2] : vector<1x8x128xf32> to vector<1xf32>
    %35 = vector.shape_cast %34 : vector<1xf32> to vector<1x1x1xf32>
    %36 = vector.extract %35[0, 0, 0] : f32 from vector<1x1x1xf32>
    %cst_10 = arith.constant 5.120000e+02 : f32
    %37 = arith.mulf %cst_10, %32 : f32
    %38 = arith.subf %36, %37 : f32
    %39 = arith.mulf %31, %31 : vector<8x128xf32>
    %40 = vector.shape_cast %39 : vector<8x128xf32> to vector<1x8x128xf32>
    %cst_11 = arith.constant dense<0.000000e+00> : vector<1xf32>
    %41 = vector.multi_reduction <add>, %40, %cst_11 [1, 2] : vector<1x8x128xf32> to vector<1xf32>
    %42 = vector.shape_cast %41 : vector<1xf32> to vector<1x1x1xf32>
    %43 = vector.extract %42[0, 0, 0] : f32 from vector<1x1x1xf32>
    %cst_12 = arith.constant 5.120000e+02 : f32
    %44 = arith.mulf %cst_12, %32 : f32
    %45 = arith.mulf %44, %32 : f32
    %46 = arith.subf %43, %45 : f32
    %cst_13 = arith.constant 0.001953125 : f32
    %47 = arith.mulf %38, %cst_13 : f32
    %cst_14 = arith.constant 0.001953125 : f32
    %48 = arith.mulf %46, %cst_14 : f32
    %49 = arith.mulf %47, %47 : f32
    %50 = arith.subf %48, %49 : f32
    %cst_15 = arith.constant 0.000000e+00 : f32
    %51 = arith.maximumf %50, %cst_15 : f32
    %c4 = arith.constant 4 : index
    %52 = memref.load %arg1[%c4] : memref<12xf32, #tpu.memory_space<smem>>
    %c6 = arith.constant 6 : index
    %53 = memref.load %arg1[%c6] : memref<12xf32, #tpu.memory_space<smem>>
    %c8 = arith.constant 8 : index
    %54 = memref.load %arg1[%c8] : memref<12xf32, #tpu.memory_space<smem>>
    %c10 = arith.constant 10 : index
    %55 = memref.load %arg1[%c10] : memref<12xf32, #tpu.memory_space<smem>>
    %c11 = arith.constant 11 : index
    %56 = memref.load %arg1[%c11] : memref<12xf32, #tpu.memory_space<smem>>
    %57 = arith.mulf %53, %52 : f32
    %58 = arith.mulf %52, %52 : f32
    %59 = arith.mulf %58, %51 : f32
    %cst_16 = arith.constant 9.99999974E-6 : f32
    %60 = arith.addf %59, %cst_16 : f32
    %61 = math.rsqrt %60 : f32
    %62 = arith.mulf %57, %61 : f32
    %63 = arith.mulf %54, %62 : f32
    %64 = arith.mulf %55, %63 : f32
    %65 = arith.mulf %63, %63 : f32
    %66 = arith.mulf %65, %51 : f32
    %cst_17 = arith.constant 9.99999974E-6 : f32
    %67 = arith.addf %66, %cst_17 : f32
    %68 = math.rsqrt %67 : f32
    %69 = arith.mulf %64, %68 : f32
    %70 = arith.mulf %69, %47 : f32
    %71 = arith.subf %56, %70 : f32
    %72 = vector.broadcast %69 : f32 to vector<8x128xf32>
    %73 = arith.mulf %72, %31 : vector<8x128xf32>
    %74 = vector.broadcast %71 : f32 to vector<8x128xf32>
    %75 = arith.addf %73, %74 : vector<8x128xf32>
    %cst_18 = arith.constant 0.000000e+00 : f32
    %76 = vector.broadcast %cst_18 : f32 to vector<8x128xf32>
    %77 = arith.maximumf %75, %76 : vector<8x128xf32>
    %c0_19 = arith.constant 0 : index
    %c0_20 = arith.constant 0 : index
    %78 = vector.load %arg3[%c0_19, %c0_20] : memref<8x128xf32, #tpu.memory_space<vmem>>, vector<8x128xf32>
    tpu.vector_store %arg3[%c0_19, %c0_20], %77 {strides = array<i32>} : memref<8x128xf32, #tpu.memory_space<vmem>>, vector<8x128xf32>,
    return
  }
  func.func @transform_0(%arg0: i32) -> i32 {
    %c0_i32 = arith.constant 0 : i32
    %c0_i32_0 = arith.constant 0 : i32
    return %c0_i32 : i32
  }
  func.func @transform_1(%arg0: i32) -> (i32, i32) {
    %c0_i32 = arith.constant 0 : i32
    %c0_i32_0 = arith.constant 0 : i32
    %c0_i32_1 = arith.constant 0 : i32
    return %c0_i32, %c0_i32_0 : i32, i32
  }
  func.func @transform_2(%arg0: i32) -> (i32, i32) {
    %c0_i32 = arith.constant 0 : i32
    %c0_i32_0 = arith.constant 0 : i32
    %c0_i32_1 = arith.constant 0 : i32
    return %c0_i32, %c0_i32_0 : i32, i32
  }
}

</mosaic_0001>

<bundles_post_ra>
// kernel: tpu_custom_call.1
= control target key start
LH: loop header
LB: loop body
LE: loop exit
PB: predicated region body
PF: predicated region fallthrough
CT: control target
= control target key end

     0   :  { %7 = vsyncpa [#allocation5], 0  ;;  %s274_s0 = inlined_call_operand.hbm [shape: f32[12], index: 0, kind: input, shape index: {}]   ;;  %s275_s1 = inlined_call_operand.hbm [shape: f32[8,128], index: 1, kind: input, shape index: {}]   ;;  %s276_s2 = inlined_call_operand.hbm [shape: f32[8,128], index: 2, kind: output, shape index: {}]  }
   0x1   :  { %8 = vsyncpa [#allocation3], 0 }
   0x2   :  { %9 = vsyncpa [#allocation4], 0  ;;  %s238_s9 = smov [#allocation2]   ;;  %s239_s12 = smov [#allocation6]  }
   0x3   :  { %17 = dma.hbm_to_smem %s274_s0, 16, %s238_s9, [#allocation5]  }
   0x4   :  { %s24_s13 = sshll.u32 %s239_s12, 4  ;;  %s25_s13 = int_to_ptr.vmem [resolvable:$true] %s24_s13 }
   0x5   :  { %s200_s14 = scalar_lea.vmem %s25_s13, 128  ;;  %p205_p1 = scmp.lt.s32.totalorder %s25_s13, %s25_s13 }
   0x6   :  { %p201_p0 = scmp.ne.s32.totalorder %s25_s13, %s200_s14  ;;  %p206_p2 = scmp.lt.s32.totalorder %s200_s14, %s200_s14 }
   0x8   :  { %p207_p3 = por %p206_p2, %p205_p1 }
   0xa   :  { %p208_p4 = pnand %p207_p3, %p201_p0 }
   0xc   :  { %211 = shalt.err (!%p208_p4)
}
   0xd   :  { %27 = dma.hbm_to_vmem [thread:$0]  %s275_s1, 128, %s25_s13, [#allocation3]  }
   0xe   :  { %232 = dma.done.wait [#allocation5], 16  }
   0xf   :  { %233 = vsyncadd [#allocation5], 4294967280 }
  0x10   :  { %234 = dma.done.wait [#allocation3], 128  }
  0x11   :  { %235 = vsyncadd [#allocation3], 4294967168 }
  0x12   :  { %34 = sfence }
  0x13   :  { %v35_v0 = vld [vmem:[#allocation6] sm:$0xff]  ;;  %s60_s0 = sld [smem:[#allocation2]]  ;;  %s240_s23 = smov 0.0  }
  0x14   :  { %36 = vadd.xlane.f32.xlu0 %v35_v0  ;;  %v46_v1 = vmul.f32 %v35_v0, %v35_v0  ;;  %s153_s27 = sld [smem:[#allocation2 + $0x2]] }
  0x15   :  { %s154_s28 = sld [smem:[#allocation2 + $0x3]] }
  0x16   :  { %s155_s9 = sld [smem:[#allocation2 + $0x4]] }
  0x18   :  { %47 = vadd.xlane.f32.xlu0 %v46_v1 }
  0x19   :  { %s64_s21 = smul.f32 %s60_s0, %s60_s0 }
  0x1a   :  { %s63_s29 = smul.f32 %s153_s27, %s60_s0 }
  0x1c   :  { %s113_s0 = smul.f32 %s155_s9, %s155_s9 }
  0x9d   :  { %v37_v2 = vpop.xlane.xlu0 %36 }
  0x9e   :  { %v38_v3 = vrot.slane %v37_v2, 4 }
  0xa0   :  { %v39_v4 = vadd.f32 %v38_v3, %v37_v2 }
  0xa1   :  { %v48_v5 = vpop.xlane.xlu0 %47 }
  0xa2   :  { %v40_v6 = vrot.slane %v39_v4, 2  ;;  %v49_v7 = vrot.slane %v48_v5, 4 }
  0xa4   :  { %v50_v8 = vadd.f32 %v49_v7, %v48_v5  ;;  %v41_v9 = vadd.f32 %v40_v6, %v39_v4 }
  0xa6   :  { %v51_v10 = vrot.slane %v50_v8, 2  ;;  %v42_v11 = vrot.slane %v41_v9, 1 }
  0xa8   :  { %v52_v12 = vadd.f32 %v51_v10, %v50_v8  ;;  %v43_v13 = vadd.f32 %v42_v11, %v41_v9 }
  0xaa   :  { %160 = vpush %v43_v13  ;;  %v53_v14 = vrot.slane %v52_v12, 1 }
  0xac   :  { %v54_v15 = vadd.f32 %v53_v14, %v52_v12 }
  0xae   :  { %162 = vpush %v54_v15 }
  0xdb   :  { %s161_s1 = spop %160 }
  0xdc   :  { %s45_s17 = smul.f32 0.001953125, %s161_s1 }
  0xde   :  { %s57_s18 = smul.f32 %s45_s17, %s45_s17 }
  0xdf   :  { %s163_s19 = spop %162 }
  0xe0   :  { %s56_s20 = smul.f32 0.001953125, %s163_s19 }
  0xe2   :  { %s58_s22 = ssub.f32 %s56_s20, %s57_s18 }
  0xe3   :  { %s156_s20 = sld [smem:[#allocation2 + $0x6]] }
  0xe4   :  { %s59_s24 = smax.f32 %s240_s23, %s58_s22 }
  0xe5   :  { %s65_s25 = smul.f32 %s64_s21, %s59_s24  ;;  %s157_s21 = sld [smem:[#allocation2 + $0x8]] }
  0xe7   :  { %s66_s26 = sadd.f32 1e-05, %s65_s25 }
  0xe9   :  { %v67_v16 = vstv %s66_s26  ;;  %s112_s22 = smul.f32 %s156_s20, %s155_s9 }
  0xea   :  { %178 = vrsqrt.f32 %v67_v16 }
  0xf7   :  { %v179_v17 = vpop.eup %178 }
  0xf8   :  { %164 = vpush %v179_v17 }
 0x129   :  { %s165_s30 = spop %164 }
 0x12a   :  { %s70_s3 = smul.f32 %s165_s30, %s63_s29  ;;  %s159_s30 = sld [smem:[#allocation2 + $0xb]] }
 0x12c   :  { %s71_s4 = smul.f32 %s70_s3, %s45_s17  ;;  %v73_v18 = vstv %s70_s3 }
 0x12d   :  { %v74_v19 = vmul.f32 %v73_v18, %v35_v0 }
 0x12e   :  { %s72_s5 = ssub.f32 %s154_s28, %s71_s4 }
 0x130   :  { %v75_v20 = vstv %s72_s5  ;;  %s78_s6 = smax.f32 %s240_s23, %s72_s5 }
 0x131   :  { %v76_v21 = vadd.f32 %v75_v20, %v74_v19  ;;  %s88_s7 = smul.f32 512.0, %s78_s6 }
 0x133   :  { %v77_v22 = vmax.f32 %v76_v21, 0.0  ;;  %s100_s11 = smul.f32 %s88_s7, %s78_s6 }
 0x135   :  { %79 = vadd.xlane.f32.xlu1 %v77_v22  ;;  %v90_v23 = vmul.f32 %v77_v22, %v77_v22 }
 0x139   :  { %91 = vadd.xlane.f32.xlu1 %v90_v23 }
 0x1be   :  { %v80_v24 = vpop.xlane.xlu1 %79 }
 0x1bf   :  { %v81_v25 = vrot.slane %v80_v24, 4 }
 0x1c1   :  { %v82_v26 = vadd.f32 %v81_v25, %v80_v24 }
 0x1c2   :  { %v92_v27 = vpop.xlane.xlu1 %91 }
 0x1c3   :  { %v83_v28 = vrot.slane %v82_v26, 2  ;;  %v93_v29 = vrot.slane %v92_v27, 4 }
 0x1c5   :  { %v94_v30 = vadd.f32 %v93_v29, %v92_v27  ;;  %v84_v31 = vadd.f32 %v83_v28, %v82_v26 }
 0x1c7   :  { %v95_v32 = vrot.slane %v94_v30, 2  ;;  %v85_v33 = vrot.slane %v84_v31, 1 }
 0x1c9   :  { %v96_v34 = vadd.f32 %v95_v32, %v94_v30  ;;  %v86_v35 = vadd.f32 %v85_v33, %v84_v31 }
 0x1cb   :  { %166 = vpush %v86_v35  ;;  %v97_v36 = vrot.slane %v96_v34, 1 }
 0x1cd   :  { %v98_v37 = vadd.f32 %v97_v36, %v96_v34 }
 0x1cf   :  { %168 = vpush %v98_v37 }
 0x1fc   :  { %s167_s8 = spop %166 }
 0x1fd   :  { %s89_s10 = ssub.f32 %s167_s8, %s88_s7  ;;  %s241_s8 = smov [#allocation7]  }
 0x1fe   :  { %s143_s9 = sshll.u32 %s241_s8, 4  ;;  %s144_s9 = int_to_ptr.vmem [resolvable:$true] %s143_s9 }
 0x1ff   :  { %s265_s12 = smul.f32 0.001953125, %s89_s10  ;;  %s212_s10 = scalar_lea.vmem %s144_s9, 128 }
 0x200   :  { %s169_s13 = spop %168  ;;  %p213_p5 = scmp.ne.s32.totalorder %s144_s9, %s212_s10 }
 0x201   :  { %s101_s14 = ssub.f32 %s169_s13, %s100_s11  ;;  %s104_s15 = smul.f32 %s265_s12, %s265_s12 }
 0x202   :  { %p217_p6 = scmp.lt.s32.totalorder %s144_s9, %s144_s9  ;;  %p218_p7 = scmp.lt.s32.totalorder %s212_s10, %s212_s10 }
 0x203   :  { %s103_s16 = smul.f32 0.001953125, %s101_s14 }
 0x204   :  { %p219_p8 = por %p218_p7, %p217_p6 }
 0x205   :  { %s105_s1 = ssub.f32 %s103_s16, %s104_s15 }
 0x206   :  { %p220_p9 = pnand %p219_p8, %p213_p5 }
 0x207   :  { %s106_s17 = smax.f32 %s240_s23, %s105_s1  ;;  %s158_s23 = sld [smem:[#allocation2 + $0xa]] }
 0x208   :  { %s114_s18 = smul.f32 %s113_s0, %s106_s17 }
 0x20a   :  { %s115_s19 = sadd.f32 1e-05, %s114_s18 }
 0x20c   :  { %v116_v38 = vstv %s115_s19 }
 0x20d   :  { %180 = vrsqrt.f32 %v116_v38 }
 0x21a   :  { %v181_v39 = vpop.eup %180 }
 0x21b   :  { %170 = vpush %v181_v39 }
 0x24c   :  { %s171_s24 = spop %170 }
 0x24d   :  { %s119_s25 = smul.f32 %s171_s24, %s112_s22 }
 0x24f   :  { %s120_s26 = smul.f32 %s157_s21, %s119_s25 }
 0x251   :  { %s122_s27 = smul.f32 %s120_s26, %s120_s26 }
 0x252   :  { %s121_s3 = smul.f32 %s158_s23, %s120_s26 }
 0x253   :  { %s123_s28 = smul.f32 %s122_s27, %s106_s17 }
 0x255   :  { %s124_s29 = sadd.f32 1e-05, %s123_s28 }
 0x257   :  { %v125_v40 = vstv %s124_s29 }
 0x258   :  { %182 = vrsqrt.f32 %v125_v40 }
 0x265   :  { %v183_v41 = vpop.eup %182 }
 0x266   :  { %172 = vpush %v183_v41 }
 0x297   :  { %s173_s4 = spop %172 }
 0x298   :  { %s128_s5 = smul.f32 %s173_s4, %s121_s3 }
 0x29a   :  { %s129_s6 = smul.f32 %s128_s5, %s265_s12  ;;  %v131_v42 = vstv %s128_s5 }
 0x29b   :  { %v132_v43 = vmul.f32 %v131_v42, %v77_v22 }
 0x29c   :  { %s130_s7 = ssub.f32 %s159_s30, %s129_s6 }
 0x29e   :  { %v133_v44 = vstv %s130_s7 }
 0x29f   :  { %v134_v45 = vadd.f32 %v133_v44, %v132_v43 }
 0x2a1   :  { %v135_v46 = vmax.f32 %v134_v45, 0.0 }
 0x2a3   :  { %136 = vst [vmem:[#allocation7] sm:$0xff] %v135_v46 }
 0x2a4   :  { %223 = shalt.err (!%p220_p9)
}
 0x2a5   :  { %146 = dma.vmem_to_hbm [thread:$0]  %s144_s9, 128, %s276_s2, [#allocation4]  }
 0x2a6   :  { %236 = dma.done.wait [#allocation4], 128  }
 0x2a7   :  { %237 = vsyncadd [#allocation4], 4294967168 }
 0x2a8   :  { %150 = vsyncpa [#allocation3], 1 }
 0x2a9   :  { %151 = vsyncpa [#allocation4], 1 }
 0x2aa   :  { %152 = vsyncpa [#allocation5], 1 }

</bundles_post_ra>
